<compile_context>
chip_gen: v7x
topology: tpu7x:2x2x1
jax: 0.10.0
libtpu: 0.0.40
codegen_flags: <defaults>
</compile_context>

<pallas_src>
import jax
import jax.numpy as jnp
from jax.experimental import pallas as pl
from jax.experimental.pallas import tpu as pltpu

HIDDEN = 256  # fixed by the module


def _round_up(x, m):
    return ((x + m - 1) // m) * m


def generator_kernel(x_ref, w1_ref, b1_ref, w2_ref, b2_ref, o_ref):
    # x_ref:  (TILE_B, K_pad)  bf16
    # w1_ref: (K_pad, 256)     bf16      b1_ref: (1, 256)   f32
    # w2_ref: (256, N_pad)     bf16      b2_ref: (1, N_pad) f32
    # o_ref:  (TILE_B, N_pad)  f32
    h = jnp.dot(x_ref[...], w1_ref[...], preferred_element_type=jnp.float32)
    h = h + b1_ref[...]
    h = h.astype(w2_ref.dtype)  # bf16 for the second MXU pass
    y = jnp.dot(h, w2_ref[...], preferred_element_type=jnp.float32)
    o_ref[...] = (y + b2_ref[...]).astype(o_ref.dtype)


def generator_forward(x, w1, b1, w2, b2, dim, *, tile_b=256):
    """y = view(((view(x) @ W1 + b1) @ W2 + b2), (B, dim0, dim1)).

    w1: (size, 256), w2: (256, size)  -- transposed vs. PyTorch Linear weight.
    """
    B = x.shape[0]
    size = dim[0] * dim[1]
    x_flat = x.reshape(B, -1).astype(jnp.float32)
    assert x_flat.shape[1] == size

    k_pad = _round_up(size, 128)   # contraction dim of first matmul
    n_pad = _round_up(size, 128)   # output lane dim (unmasked stores)

    tile_b = min(tile_b, _round_up(B, 8))
    b_pad = _round_up(B, tile_b)
    num_tiles = b_pad // tile_b

    # Zero-padded bf16 operands (padded rows/cols contribute exact zeros).
    x_p = jnp.zeros((b_pad, k_pad), jnp.bfloat16)
    x_p = x_p.at[:B, :size].set(x_flat.astype(jnp.bfloat16))
    w1_p = jnp.zeros((k_pad, HIDDEN), jnp.bfloat16)
    w1_p = w1_p.at[:size, :].set(w1.astype(jnp.bfloat16))
    b1_p = b1.reshape(1, HIDDEN).astype(jnp.float32)
    w2_p = jnp.zeros((HIDDEN, n_pad), jnp.bfloat16)
    w2_p = w2_p.at[:, :size].set(w2.astype(jnp.bfloat16))
    b2_p = jnp.zeros((1, n_pad), jnp.float32)
    b2_p = b2_p.at[:, :size].set(b2.reshape(1, size).astype(jnp.float32))

    out = pl.pallas_call(
        generator_kernel,
        out_shape=jax.ShapeDtypeStruct((b_pad, n_pad), jnp.float32),
        grid=(num_tiles,),
        in_specs=[
            pl.BlockSpec((tile_b, k_pad), lambda i: (i, 0)),   # x: batch-tiled
            pl.BlockSpec((k_pad, HIDDEN), lambda i: (0, 0)),   # W1: resident
            pl.BlockSpec((1, HIDDEN), lambda i: (0, 0)),       # b1: resident
            pl.BlockSpec((HIDDEN, n_pad), lambda i: (0, 0)),   # W2: resident
            pl.BlockSpec((1, n_pad), lambda i: (0, 0)),        # b2: resident
        ],
        out_specs=pl.BlockSpec((tile_b, n_pad), lambda i: (i, 0)),
        compiler_params=pltpu.CompilerParams(
            dimension_semantics=("parallel",),
        ),
    )(x_p, w1_p, b1_p, w2_p, b2_p)

    return out[:B, :size].reshape(B, dim[0], dim[1])


def init_params(key, dim):
    # PyTorch-like uniform(-1/sqrt(fan_in), +1/sqrt(fan_in)) init; weights
    # stored as (in, out), i.e. transpose of nn.Linear's (out, in).
    size = dim[0] * dim[1]
    k1, k2, k3, k4 = jax.random.split(key, 4)

    def lin(kw, kb, fan_in, fan_out):
        bound = 1.0 / jnp.sqrt(fan_in)
        w = jax.random.uniform(kw, (fan_in, fan_out), jnp.float32, -bound, bound)
        b = jax.random.uniform(kb, (fan_out,), jnp.float32, -bound, bound)
        return w, b

    w1, b1 = lin(k1, k2, size, HIDDEN)
    w2, b2 = lin(k3, k4, HIDDEN, size)
    return w1, b1, w2, b2


if __name__ == "__main__":
    key = jax.random.PRNGKey(0)
    kx, kp = jax.random.split(key)

    dim = (28, 28)                 # size = 784 (MNIST-style generator output)
    B = 2
    x = jax.random.normal(kx, (B, dim[0], dim[1]), jnp.float32)
    w1, b1, w2, b2 = init_params(kp, dim)

    out = generator_forward(x, w1, b1, w2, b2, dim)
    out = jax.block_until_ready(out)

    # Reference in plain JAX using the same bf16 casts / f32 accumulation.
    x_bf = x.reshape(B, -1).astype(jnp.bfloat16)
    h_ref = jnp.dot(x_bf, w1.astype(jnp.bfloat16),
                    preferred_element_type=jnp.float32) + b1.reshape(1, -1)
    h_ref = h_ref.astype(jnp.bfloat16)
    y_ref = jnp.dot(h_ref, w2.astype(jnp.bfloat16),
                    preferred_element_type=jnp.float32) + b2.reshape(1, -1)
    ref = y_ref.reshape(B, dim[0], dim[1])

    assert out.shape == (B, dim[0], dim[1])
    assert jnp.allclose(out, ref, atol=2e-3, rtol=2e-3)

    print("KERNEL_OK")
</pallas_src>

<mosaic_0001>
module attributes {stable_mosaic.version = 11 : i64} {
  func.func @generator_kernel(%arg0: i32, %arg1: memref<8x896xbf16, #tpu.memory_space<vmem>>, %arg2: memref<896x256xbf16, #tpu.memory_space<vmem>>, %arg3: memref<1x256xf32, #tpu.memory_space<vmem>>, %arg4: memref<256x896xbf16, #tpu.memory_space<vmem>>, %arg5: memref<1x896xf32, #tpu.memory_space<vmem>>, %arg6: memref<8x896xf32, #tpu.memory_space<vmem>>) attributes {dimension_semantics = [#tpu.dimension_semantics<parallel>], iteration_bounds = array<i64: 1>, scalar_prefetch = 0 : i64, scratch_operands = 0 : i64, tpu.core_type = #tpu.core_type<tc>, window_params = [{transform_indices = @transform_0, window_bounds = array<i64: 8, 896>}, {pipeline_mode = #tpu.pipeline_mode<synchronous>, transform_indices = @transform_1, window_bounds = array<i64: 896, 256>}, {pipeline_mode = #tpu.pipeline_mode<synchronous>, transform_indices = @transform_2, window_bounds = array<i64: 1, 256>}, {pipeline_mode = #tpu.pipeline_mode<synchronous>, transform_indices = @transform_3, window_bounds = array<i64: 256, 896>}, {pipeline_mode = #tpu.pipeline_mode<synchronous>, transform_indices = @transform_4, window_bounds = array<i64: 1, 896>}, {transform_indices = @transform_5, window_bounds = array<i64: 8, 896>}]} {
    %c0 = arith.constant 0 : index
    %c0_0 = arith.constant 0 : index
    %0 = vector.load %arg1[%c0, %c0_0] : memref<8x896xbf16, #tpu.memory_space<vmem>>, vector<8x896xbf16>
    %c0_1 = arith.constant 0 : index
    %c0_2 = arith.constant 0 : index
    %1 = vector.load %arg2[%c0_1, %c0_2] : memref<896x256xbf16, #tpu.memory_space<vmem>>, vector<896x256xbf16>
    %cst = arith.constant dense<0.000000e+00> : vector<8x256xf32>
    %2 = tpu.matmul %0, %1, %cst {dimension_numbers = #tpu.dot_dimension_numbers<[1], [0], [0], [1], [0, 0, 1, 1], [], []>} : vector<8x896xbf16>, vector<896x256xbf16>, vector<8x256xf32> -> vector<8x256xf32>
    %c0_3 = arith.constant 0 : index
    %c0_4 = arith.constant 0 : index
    %3 = vector.load %arg3[%c0_3, %c0_4] : memref<1x256xf32, #tpu.memory_space<vmem>>, vector<1x256xf32>
    %4 = vector.broadcast %3 : vector<1x256xf32> to vector<8x256xf32>
    %5 = arith.addf %2, %4 : vector<8x256xf32>
    %6 = arith.truncf %5 : vector<8x256xf32> to vector<8x256xbf16>
    %c0_5 = arith.constant 0 : index
    %c0_6 = arith.constant 0 : index
    %7 = vector.load %arg4[%c0_5, %c0_6] : memref<256x896xbf16, #tpu.memory_space<vmem>>, vector<256x896xbf16>
    %cst_7 = arith.constant dense<0.000000e+00> : vector<8x896xf32>
    %8 = tpu.matmul %6, %7, %cst_7 {dimension_numbers = #tpu.dot_dimension_numbers<[1], [0], [0], [1], [0, 0, 1, 1], [], []>} : vector<8x256xbf16>, vector<256x896xbf16>, vector<8x896xf32> -> vector<8x896xf32>
    %c0_8 = arith.constant 0 : index
    %c0_9 = arith.constant 0 : index
    %9 = vector.load %arg5[%c0_8, %c0_9] : memref<1x896xf32, #tpu.memory_space<vmem>>, vector<1x896xf32>
    %10 = vector.broadcast %9 : vector<1x896xf32> to vector<8x896xf32>
    %11 = arith.addf %8, %10 : vector<8x896xf32>
    %c0_10 = arith.constant 0 : index
    %c0_11 = arith.constant 0 : index
    %12 = vector.load %arg6[%c0_10, %c0_11] : memref<8x896xf32, #tpu.memory_space<vmem>>, vector<8x896xf32>
    tpu.vector_store %arg6[%c0_10, %c0_11], %11 {strides = array<i32>} : memref<8x896xf32, #tpu.memory_space<vmem>>, vector<8x896xf32>,
    return
  }
  func.func @transform_0(%arg0: i32) -> (i32, i32) {
    %c0_i32 = arith.constant 0 : i32
    %c0_i32_0 = arith.constant 0 : i32
    return %arg0, %c0_i32 : i32, i32
  }
  func.func @transform_1(%arg0: i32) -> (i32, i32) {
    %c0_i32 = arith.constant 0 : i32
    %c0_i32_0 = arith.constant 0 : i32
    %c0_i32_1 = arith.constant 0 : i32
    return %c0_i32, %c0_i32_0 : i32, i32
  }
  func.func @transform_2(%arg0: i32) -> (i32, i32) {
    %c0_i32 = arith.constant 0 : i32
    %c0_i32_0 = arith.constant 0 : i32
    %c0_i32_1 = arith.constant 0 : i32
    return %c0_i32, %c0_i32_0 : i32, i32
  }
  func.func @transform_3(%arg0: i32) -> (i32, i32) {
    %c0_i32 = arith.constant 0 : i32
    %c0_i32_0 = arith.constant 0 : i32
    %c0_i32_1 = arith.constant 0 : i32
    return %c0_i32, %c0_i32_0 : i32, i32
  }
  func.func @transform_4(%arg0: i32) -> (i32, i32) {
    %c0_i32 = arith.constant 0 : i32
    %c0_i32_0 = arith.constant 0 : i32
    %c0_i32_1 = arith.constant 0 : i32
    return %c0_i32, %c0_i32_0 : i32, i32
  }
  func.func @transform_5(%arg0: i32) -> (i32, i32) {
    %c0_i32 = arith.constant 0 : i32
    %c0_i32_0 = arith.constant 0 : i32
    return %arg0, %c0_i32 : i32, i32
  }
}

</mosaic_0001>

<bundles_post_ra>
// kernel: tpu_custom_call.1
= control target key start
LH: loop header
LB: loop body
LE: loop exit
PB: predicated region body
PF: predicated region fallthrough
CT: control target
= control target key end

     0   :  { %10 = vsyncpa [#allocation3], 0  ;;  %s2706_s0 = inlined_call_operand.hbm [shape: bf16[8,896], index: 0, kind: input, shape index: {}]   ;;  %s2707_s1 = inlined_call_operand.hbm [shape: bf16[896,256], index: 1, kind: input, shape index: {}]   ;;  %s2708_s2 = inlined_call_operand.vmem [shape: f32[1,256], index: 2, kind: input, shape index: {}]   ;;  %s2709_s3 = inlined_call_operand.hbm [shape: bf16[256,896], index: 3, kind: input, shape index: {}]   ;;  %s2710_s4 = inlined_call_operand.vmem [shape: f32[1,896], index: 4, kind: input, shape index: {}]   ;;  %s2711_s5 = inlined_call_operand.hbm [shape: f32[8,896], index: 5, kind: output, shape index: {}]  }
   0x1   :  { %11 = vsyncpa [#allocation6], 0 }
   0x2   :  { %12 = vsyncpa [#allocation4], 0  ;;  %s2572_s18 = smov [#allocation5]   ;;  %s2478_s22 = scalar_lea.hbm %s2707_s1, 14336 }
   0x3   :  { %s28_s19 = sshll.u32 %s2572_s18, 4  ;;  %p2479_p0 = scmp.ne.s32.totalorder %s2707_s1, %s2478_s22  ;;  %s29_s19 = int_to_ptr.vmem [resolvable:$true] %s28_s19 }
   0x4   :  { %p2482_p1 = scmp.lt.u32.totalorder %s2478_s22, %s2707_s1 }
   0x6   :  { %p2484_p2 = pnand %p2482_p1, %p2479_p0 }
   0x8   :  { %2487 = shalt.err (!%p2484_p2)
}
   0x9   :  { %s2488_s27 = scalar_lea.vmem %s29_s19, 14336  ;;  %p2493_p4 = scmp.lt.s32.totalorder %s29_s19, %s29_s19 }
   0xa   :  { %p2489_p3 = scmp.ne.s32.totalorder %s29_s19, %s2488_s27  ;;  %p2494_p5 = scmp.lt.s32.totalorder %s2488_s27, %s2488_s27 }
   0xc   :  { %p2495_p6 = por %p2494_p5, %p2493_p4 }
   0xe   :  { %p2496_p7 = pnand %p2495_p6, %p2489_p3 }
  0x10   :  { %2499 = shalt.err (!%p2496_p7)
}
  0x11   :  { %s2573_s28 = smov 128   ;;  %s2574_s29 = smov 8  }
  0x12   :  { %34 = dma.hbm_to_vmem [thread:$0]  %s2707_s1, 14336, %s29_s19, [#allocation6], %s2573_s28, %s2573_s28, %s2574_s29  }
  0x13   :  { %s2575_s7 = smov [#allocation2]   ;;  %s2576_s9 = smov [#allocation7]  }
  0x14   :  { %s19_s8 = sshll.u32 %s2575_s7, 4  ;;  %s42_s10 = sshll.u32 %s2576_s9, 4  ;;  %s20_s8 = int_to_ptr.vmem [resolvable:$true] %s19_s8  ;;  %s43_s10 = int_to_ptr.vmem [resolvable:$true] %s42_s10 }
  0x15   :  { %s2500_s13 = scalar_lea.hbm %s2706_s0, 448 }
  0x16   :  { %p2501_p8 = scmp.ne.s32.totalorder %s2706_s0, %s2500_s13  ;;  %p2504_p9 = scmp.lt.u32.totalorder %s2500_s13, %s2706_s0 }
  0x18   :  { %p2506_p10 = pnand %p2504_p9, %p2501_p8 }
  0x1a   :  { %2509 = shalt.err (!%p2506_p10)
}
  0x1b   :  { %s2510_s1 = scalar_lea.vmem %s20_s8, 448  ;;  %p2515_p12 = scmp.lt.s32.totalorder %s20_s8, %s20_s8 }
  0x1c   :  { %p2511_p11 = scmp.ne.s32.totalorder %s20_s8, %s2510_s1  ;;  %p2516_p13 = scmp.lt.s32.totalorder %s2510_s1, %s2510_s1 }
  0x1e   :  { %p2517_p0 = por %p2516_p13, %p2515_p12 }
  0x20   :  { %p2518_p1 = pnand %p2517_p0, %p2511_p11 }
  0x22   :  { %2521 = shalt.err (!%p2518_p1)
}
  0x23   :  { %22 = dma.hbm_to_vmem [thread:$0]  %s2706_s0, 448, %s20_s8, [#allocation3]  }
  0x24   :  { %s2522_s22 = scalar_lea.hbm %s2709_s3, 14336 }
  0x25   :  { %p2523_p2 = scmp.ne.s32.totalorder %s2709_s3, %s2522_s22  ;;  %p2526_p3 = scmp.lt.u32.totalorder %s2522_s22, %s2709_s3 }
  0x27   :  { %p2528_p4 = pnand %p2526_p3, %p2523_p2 }
  0x29   :  { %2531 = shalt.err (!%p2528_p4)
}
  0x2a   :  { %s2532_s27 = scalar_lea.vmem %s43_s10, 14336  ;;  %p2537_p6 = scmp.lt.s32.totalorder %s43_s10, %s43_s10 }
  0x2b   :  { %p2533_p5 = scmp.ne.s32.totalorder %s43_s10, %s2532_s27  ;;  %p2538_p7 = scmp.lt.s32.totalorder %s2532_s27, %s2532_s27 }
  0x2d   :  { %p2539_p8 = por %p2538_p7, %p2537_p6 }
  0x2f   :  { %p2540_p9 = pnand %p2539_p8, %p2533_p5 }
  0x31   :  { %2543 = shalt.err (!%p2540_p9)
}
  0x32   :  { %s2577_s0 = smov 448   ;;  %s2578_s28 = smov 28  }
  0x33   :  { %48 = dma.hbm_to_vmem [thread:$0]  %s2709_s3, 14336, %s43_s10, [#allocation6], %s2577_s0, %s2577_s0, %s2578_s28  }
  0x34   :  { %2566 = dma.done.wait [#allocation3], 448  }
  0x35   :  { %2567 = vsyncadd [#allocation3], 4294966848 }
  0x36   :  { %2568 = dma.done.wait [#allocation6], 28672  }
  0x37   :  { %2569 = vsyncadd [#allocation6], 4294938624  ;;  %v2143_v0 = vld [vmem:[#allocation5 + $0x4] ss:$8 sps:$4 sm:$0xff]   ;;  %v2145_v1 = vld [vmem:[#allocation5] ss:$8 sps:$4 sm:$0xff]  }
  0x38   :  { %774 = vmatprep.subr.bf16.mxu0 %v2143_v0  ;;  %v2146_v2 = vld [vmem:[#allocation5 + $0x14] ss:$8 sps:$4 sm:$0xff]   ;;  %v2148_v3 = vld [vmem:[#allocation5 + $0x10] ss:$8 sps:$4 sm:$0xff]   ;;  %v2149_v4 = vld [vmem:[#allocation5 + $0x24] ss:$8 sps:$4 sm:$0xff]  }
  0x39   :  { %775 = vmatpush1.bf16.msra.mxu0 %v2145_v1  ;;  %v2151_v5 = vld [vmem:[#allocation5 + $0x20] ss:$8 sps:$4 sm:$0xff]   ;;  %v2152_v6 = vld [vmem:[#allocation5 + $0x34] ss:$8 sps:$4 sm:$0xff]   ;;  %v2154_v7 = vld [vmem:[#allocation5 + $0x30] ss:$8 sps:$4 sm:$0xff]  }
  0x3a   :  { %776 = vmatprep.subr.bf16.mxu0 %v2146_v2  ;;  %v2155_v8 = vld [vmem:[#allocation5 + $0x44] ss:$8 sps:$4 sm:$0xff]   ;;  %v2157_v9 = vld [vmem:[#allocation5 + $0x40] ss:$8 sps:$4 sm:$0xff]   ;;  %v2158_v10 = vld [vmem:[#allocation5 + $0x54] ss:$8 sps:$4 sm:$0xff]  }
  0x3b   :  { %v2160_v11 = vld [vmem:[#allocation5 + $0x50] ss:$8 sps:$4 sm:$0xff]   ;;  %v2161_v12 = vld [vmem:[#allocation5 + $0x64] ss:$8 sps:$4 sm:$0xff]   ;;  %v2163_v15 = vld [vmem:[#allocation5 + $0x60] ss:$8 sps:$4 sm:$0xff]  }
  0x3c   :  { %v61_v13 = vld [vmem:[#allocation2] sm:$0xff]  ;;  %v2164_v16 = vld [vmem:[#allocation5 + $0x74] ss:$8 sps:$4 sm:$0xff]   ;;  %v2166_v17 = vld [vmem:[#allocation5 + $0x70] ss:$8 sps:$4 sm:$0xff]  }
  0x3d   :  { %777 = vmatpush1.bf16.msra.mxu0 %v2148_v3  ;;  %v1868_v14 = vcombine.high %v61_v13, %v61_v13  ;;  %v2167_v18 = vld [vmem:[#allocation5 + $0x84] ss:$8 sps:$4 sm:$0xff]   ;;  %v2169_v19 = vld [vmem:[#allocation5 + $0x80] ss:$8 sps:$4 sm:$0xff]   ;;  %v2170_v20 = vld [vmem:[#allocation5 + $0x94] ss:$8 sps:$4 sm:$0xff]   ;;  %v1867_v36 = vcombine.low %v61_v13, %v61_v13 }
  0x3e   :  { %778 = vmatprep.subr.bf16.mxu0 %v2149_v4  ;;  %v2172_v21 = vld [vmem:[#allocation5 + $0x90] ss:$8 sps:$4 sm:$0xff]   ;;  %v2173_v22 = vld [vmem:[#allocation5 + $0xa4] ss:$8 sps:$4 sm:$0xff]   ;;  %v2175_v23 = vld [vmem:[#allocation5 + $0xa0] ss:$8 sps:$4 sm:$0xff]  }
  0x3f   :  { %806 = vmatprep.mubr.bf16.mxu0 %v1868_v14  ;;  %v2176_v24 = vld [vmem:[#allocation5 + $0xb4] ss:$8 sps:$4 sm:$0xff]   ;;  %v2178_v25 = vld [vmem:[#allocation5 + $0xb0] ss:$8 sps:$4 sm:$0xff]   ;;  %v2179_v26 = vld [vmem:[#allocation5 + $0xc4] ss:$8 sps:$4 sm:$0xff]  }
  0x40   :  { %v2181_v27 = vld [vmem:[#allocation5 + $0xc0] ss:$8 sps:$4 sm:$0xff]   ;;  %v2182_v28 = vld [vmem:[#allocation5 + $0xd4] ss:$8 sps:$4 sm:$0xff]   ;;  %v2184_v29 = vld [vmem:[#allocation5 + $0xd0] ss:$8 sps:$4 sm:$0xff]  }
  0x41   :  { %779 = vmatpush1.bf16.msra.mxu0 %v2151_v5  ;;  %v2185_v30 = vld [vmem:[#allocation5 + $0xe4] ss:$8 sps:$4 sm:$0xff]   ;;  %v2187_v31 = vld [vmem:[#allocation5 + $0xe0] ss:$8 sps:$4 sm:$0xff]   ;;  %v2188_v32 = vld [vmem:[#allocation5 + $0xf4] ss:$8 sps:$4 sm:$0xff]  }
  0x42   :  { %780 = vmatprep.subr.bf16.mxu0 %v2152_v6  ;;  %v2190_v33 = vld [vmem:[#allocation5 + $0xf0] ss:$8 sps:$4 sm:$0xff]   ;;  %v2195_v34 = vld [vmem:[#allocation5 + $0x104] ss:$8 sps:$4 sm:$0xff]   ;;  %v2193_v37 = vld [vmem:[#allocation5 + $0x100] ss:$8 sps:$4 sm:$0xff]  }
  0x43   :  { %v2647_v35 = vld [vmem:[#allocation2 + $0x8] sm:$0xff]  ;;  %v2198_v39 = vld [vmem:[#allocation5 + $0x114] ss:$8 sps:$4 sm:$0xff]   ;;  %v2199_v42 = vld [vmem:[#allocation5 + $0x120] ss:$8 sps:$4 sm:$0xff]  }
  0x44   :  { %v1870_v38 = vcombine.high %v2647_v35, %v2647_v35  ;;  %v2196_v40 = vld [vmem:[#allocation5 + $0x110] ss:$8 sps:$4 sm:$0xff]   ;;  %v2201_v41 = vld [vmem:[#allocation5 + $0x124] ss:$8 sps:$4 sm:$0xff]   ;;  %v2204_v43 = vld [vmem:[#allocation5 + $0x134] ss:$8 sps:$4 sm:$0xff]  }
  0x45   :  { %781 = vmatpush1.bf16.msra.mxu0 %v2154_v7  ;;  %v2202_v44 = vld [vmem:[#allocation5 + $0x130] ss:$8 sps:$4 sm:$0xff]   ;;  %v2207_v45 = vld [vmem:[#allocation5 + $0x144] ss:$8 sps:$4 sm:$0xff]   ;;  %v2205_v46 = vld [vmem:[#allocation5 + $0x140] ss:$8 sps:$4 sm:$0xff]  }
  0x46   :  { %782 = vmatprep.subr.bf16.mxu0 %v2155_v8  ;;  %v2210_v47 = vld [vmem:[#allocation5 + $0x154] ss:$8 sps:$4 sm:$0xff]   ;;  %v2208_v48 = vld [vmem:[#allocation5 + $0x150] ss:$8 sps:$4 sm:$0xff]   ;;  %v2213_v49 = vld [vmem:[#allocation5 + $0x164] ss:$8 sps:$4 sm:$0xff]  }
  0x47   :  { %v2211_v50 = vld [vmem:[#allocation5 + $0x160] ss:$8 sps:$4 sm:$0xff]   ;;  %v2216_v51 = vld [vmem:[#allocation5 + $0x174] ss:$8 sps:$4 sm:$0xff]   ;;  %v2214_v52 = vld [vmem:[#allocation5 + $0x170] ss:$8 sps:$4 sm:$0xff]  }
  0x48   :  { %v2219_v53 = vld [vmem:[#allocation5 + $0x184] ss:$8 sps:$4 sm:$0xff]   ;;  %v2217_v54 = vld [vmem:[#allocation5 + $0x180] ss:$8 sps:$4 sm:$0xff]   ;;  %v2222_v55 = vld [vmem:[#allocation5 + $0x194] ss:$8 sps:$4 sm:$0xff]  }
  0x49   :  { %783 = vmatpush1.bf16.msra.mxu0 %v2157_v9  ;;  %v2318_v56 = vld [vmem:[#allocation7 + $0x4] ss:$28 sps:$4 sm:$0xff]   ;;  %v2321_v58 = vld [vmem:[#allocation7 + $0x3c] ss:$28 sps:$4 sm:$0xff]   ;;  %v2324_v62 = vld [vmem:[#allocation7 + $0x74] ss:$28 sps:$4 sm:$0xff]  }
  0x4a   :  { %784 = vmatprep.subr.bf16.mxu0 %v2158_v10  ;;  %v2320_v57 = vld [vmem:[#allocation7] ss:$28 sps:$4 sm:$0xff]   ;;  %v2220_v59 = vld [vmem:[#allocation5 + $0x190] ss:$8 sps:$4 sm:$0xff]   ;;  %v2225_v60 = vld [vmem:[#allocation5 + $0x1a4] ss:$8 sps:$4 sm:$0xff]   ;;  %1681 = vmatprep.subr.bf16.mxu1 %v2318_v56 }
  0x4b   :  { %1682 = vmatpush1.bf16.msra.mxu1 %v2320_v57  ;;  %v2323_v61 = vld [vmem:[#allocation7 + $0x38] ss:$28 sps:$4 sm:$0xff]   ;;  %v2223_v63 = vld [vmem:[#allocation5 + $0x1a0] ss:$8 sps:$4 sm:$0xff]   ;;  %v2326_v1 = vld [vmem:[#allocation7 + $0x70] ss:$28 sps:$4 sm:$0xff]  }
  0x4c   :  { %1683 = vmatprep.subr.bf16.mxu1 %v2321_v58  ;;  %v2228_v0 = vld [vmem:[#allocation5 + $0x1b4] ss:$8 sps:$4 sm:$0xff]   ;;  %v2327_v2 = vld [vmem:[#allocation7 + $0xac] ss:$28 sps:$4 sm:$0xff]   ;;  %v2226_v3 = vld [vmem:[#allocation5 + $0x1b0] ss:$8 sps:$4 sm:$0xff]  }
  0x4d   :  { %785 = vmatpush1.bf16.msra.mxu0 %v2160_v11  ;;  %v2231_v4 = vld [vmem:[#allocation5 + $0x1c4] ss:$8 sps:$4 sm:$0xff]   ;;  %v2229_v7 = vld [vmem:[#allocation5 + $0x1c0] ss:$8 sps:$4 sm:$0xff]   ;;  %v2234_v8 = vld [vmem:[#allocation5 + $0x1d4] ss:$8 sps:$4 sm:$0xff]  }
  0x4e   :  { %786 = vmatprep.subr.bf16.mxu0 %v2161_v12  ;;  %v2329_v5 = vld [vmem:[#allocation7 + $0xa8] ss:$28 sps:$4 sm:$0xff]   ;;  %v2332_v9 = vld [vmem:[#allocation7 + $0xe0] ss:$28 sps:$4 sm:$0xff]   ;;  %v2232_v11 = vld [vmem:[#allocation5 + $0x1d0] ss:$8 sps:$4 sm:$0xff]  }
  0x4f   :  { %1684 = vmatpush1.bf16.msra.mxu1 %v2323_v61  ;;  %v2330_v6 = vld [vmem:[#allocation7 + $0xe4] ss:$28 sps:$4 sm:$0xff]   ;;  %v2333_v10 = vld [vmem:[#allocation7 + $0x11c] ss:$28 sps:$4 sm:$0xff]   ;;  %v2336_v14 = vld [vmem:[#allocation7 + $0x154] ss:$28 sps:$4 sm:$0xff]  }
  0x50   :  { %1685 = vmatprep.subr.bf16.mxu1 %v2324_v62  ;;  %v2237_v12 = vld [vmem:[#allocation5 + $0x1e4] ss:$8 sps:$4 sm:$0xff]   ;;  %v2335_v13 = vld [vmem:[#allocation7 + $0x118] ss:$28 sps:$4 sm:$0xff]  }
  0x51   :  { %787 = vmatpush1.bf16.msra.mxu0 %v2163_v15  ;;  %v2235_v15 = vld [vmem:[#allocation5 + $0x1e0] ss:$8 sps:$4 sm:$0xff]   ;;  %v2272_v56 = vld [vmem:[#allocation5 + $0x294] ss:$8 sps:$4 sm:$0xff]   ;;  %v2270_v57 = vld [vmem:[#allocation5 + $0x290] ss:$8 sps:$4 sm:$0xff]  }
  0x52   :  { %788 = vmatprep.subr.bf16.mxu0 %v2164_v16  ;;  %v2240_v16 = vld [vmem:[#allocation5 + $0x1f4] ss:$8 sps:$4 sm:$0xff]   ;;  %v2275_v58 = vld [vmem:[#allocation5 + $0x2a4] ss:$8 sps:$4 sm:$0xff]   ;;  %v2276_v61 = vld [vmem:[#allocation5 + $0x2b0] ss:$8 sps:$4 sm:$0xff]  }
  0x53   :  { %1686 = vmatpush1.bf16.msra.mxu1 %v2326_v1  ;;  %v2281_v62 = vld [vmem:[#allocation5 + $0x2c4] ss:$8 sps:$4 sm:$0xff]   ;;  %v2282_v1 = vld [vmem:[#allocation5 + $0x2d0] ss:$8 sps:$4 sm:$0xff]  }
  0x54   :  { %1687 = vmatprep.subr.bf16.mxu1 %v2327_v2  ;;  %v2287_v2 = vld [vmem:[#allocation5 + $0x2e4] ss:$8 sps:$4 sm:$0xff]  }
  0x55   :  { %789 = vmatpush1.bf16.msra.mxu0 %v2166_v17  ;;  %v2338_v17 = vld [vmem:[#allocation7 + $0x150] ss:$28 sps:$4 sm:$0xff]  }
  0x56   :  { %790 = vmatprep.subr.bf16.mxu0 %v2167_v18  ;;  %v2339_v18 = vld [vmem:[#allocation7 + $0x18c] ss:$28 sps:$4 sm:$0xff]  }
  0x57   :  { %1688 = vmatpush1.bf16.msra.mxu1 %v2329_v5  ;;  %v2288_v5 = vld [vmem:[#allocation5 + $0x2f0] ss:$8 sps:$4 sm:$0xff]  }
  0x58   :  { %1689 = vmatprep.subr.bf16.mxu1 %v2330_v6  ;;  %v2295_v6 = vld [vmem:[#allocation5 + $0x304] ss:$8 sps:$4 sm:$0xff]  }
  0x59   :  { %791 = vmatpush1.bf16.msra.mxu0 %v2169_v19  ;;  %v2238_v19 = vld [vmem:[#allocation5 + $0x1f0] ss:$8 sps:$4 sm:$0xff]  }
  0x5a   :  { %792 = vmatprep.subr.bf16.mxu0 %v2170_v20  ;;  %v2245_v20 = vld [vmem:[#allocation5 + $0x204] ss:$8 sps:$4 sm:$0xff]  }
  0x5b   :  { %1690 = vmatpush1.bf16.msra.mxu1 %v2332_v9  ;;  %v2298_v9 = vld [vmem:[#allocation5 + $0x314] ss:$8 sps:$4 sm:$0xff]  }
  0x5c   :  { %1691 = vmatprep.subr.bf16.mxu1 %v2333_v10  ;;  %v2296_v10 = vld [vmem:[#allocation5 + $0x310] ss:$8 sps:$4 sm:$0xff]  }
  0x5d   :  { %793 = vmatpush1.bf16.msra.mxu0 %v2172_v21  ;;  %v2651_v21 = vld [vmem:[#allocation2 + $0x10] sm:$0xff] }
  0x5e   :  { %794 = vmatprep.subr.bf16.mxu0 %v2173_v22  ;;  %v2341_v22 = vld [vmem:[#allocation7 + $0x188] ss:$28 sps:$4 sm:$0xff]  }
  0x5f   :  { %1692 = vmatpush1.bf16.msra.mxu1 %v2335_v13  ;;  %v2299_v13 = vld [vmem:[#allocation5 + $0x320] ss:$8 sps:$4 sm:$0xff]  }
  0x60   :  { %1693 = vmatprep.subr.bf16.mxu1 %v2336_v14  ;;  %v2304_v14 = vld [vmem:[#allocation5 + $0x334] ss:$8 sps:$4 sm:$0xff]  }
  0x61   :  { %795 = vmatpush1.bf16.msra.mxu0 %v2175_v23  ;;  %v2342_v23 = vld [vmem:[#allocation7 + $0x1c4] ss:$28 sps:$4 sm:$0xff]  }
  0x62   :  { %796 = vmatprep.subr.bf16.mxu0 %v2176_v24  ;;  %v2243_v24 = vld [vmem:[#allocation5 + $0x200] ss:$8 sps:$4 sm:$0xff]  }
  0x63   :  { %1694 = vmatpush1.bf16.msra.mxu1 %v2338_v17  ;;  %v2305_v17 = vld [vmem:[#allocation5 + $0x340] ss:$8 sps:$4 sm:$0xff]  }
  0x64   :  { %1695 = vmatprep.subr.bf16.mxu1 %v2339_v18  ;;  %v2310_v18 = vld [vmem:[#allocation5 + $0x354] ss:$8 sps:$4 sm:$0xff]  }
  0x65   :  { %797 = vmatpush1.bf16.msra.mxu0 %v2178_v25  ;;  %v1869_v25 = vcombine.low %v2647_v35, %v2647_v35  ;;  %v2254_v35 = vld [vmem:[#allocation5 + $0x234] ss:$8 sps:$4 sm:$0xff]  }
  0x66   :  { %798 = vmatprep.subr.bf16.mxu0 %v2179_v26  ;;  %v2248_v26 = vld [vmem:[#allocation5 + $0x214] ss:$8 sps:$4 sm:$0xff]  }
  0x67   :  { %1696 = vmatpush1.bf16.msra.mxu1 %v2341_v22  ;;  %v2316_v22 = vld [vmem:[#allocation5 + $0x374] ss:$8 sps:$4 sm:$0xff]  }
  0x68   :  { %1697 = vmatprep.subr.bf16.mxu1 %v2342_v23  ;;  %v2314_v23 = vld [vmem:[#allocation5 + $0x370] ss:$8 sps:$4 sm:$0xff]  }
  0x69   :  { %799 = vmatpush1.bf16.msra.mxu0 %v2181_v27  ;;  %v1872_v27 = vcombine.high %v2651_v21, %v2651_v21 }
  0x6a   :  { %800 = vmatprep.subr.bf16.mxu0 %v2182_v28  ;;  %v2344_v28 = vld [vmem:[#allocation7 + $0x1c0] ss:$28 sps:$4 sm:$0xff]  }
  0x6b   :  { %1698 = vmatpush1.bf16.msra.mxu1 %v2344_v28  ;;  %v179_v28 = vlaneseq }
  0x6d   :  { %801 = vmatpush1.bf16.msra.mxu0 %v2184_v29  ;;  %v2345_v29 = vld [vmem:[#allocation7 + $0x1fc] ss:$28 sps:$4 sm:$0xff]  }
  0x6e   :  { %802 = vmatprep.subr.bf16.mxu0 %v2185_v30  ;;  %v2246_v30 = vld [vmem:[#allocation5 + $0x210] ss:$8 sps:$4 sm:$0xff]   ;;  %1699 = vmatprep.subr.bf16.mxu1 %v2345_v29  ;;  %v2659_v29 = vshrl.u32 %v179_v28, 7  ;;  %v2443_v28 = vld [vmem:[#allocation7 + $0x20c] ss:$28 sps:$4 sm:$0xff]  }
  0x71   :  { %803 = vmatpush1.bf16.msra.mxu0 %v2187_v31  ;;  %v2251_v31 = vld [vmem:[#allocation5 + $0x224] ss:$8 sps:$4 sm:$0xff]  }
  0x72   :  { %804 = vmatprep.subr.bf16.mxu0 %v2188_v32  ;;  %v2347_v32 = vld [vmem:[#allocation7 + $0x1f8] ss:$28 sps:$4 sm:$0xff]  }
  0x73   :  { %1700 = vmatpush1.bf16.msra.mxu1 %v2347_v32  ;;  %v185_v32 = vsub.s32 1, %v2659_v29 }
  0x75   :  { %805 = vmatpush1.bf16.msra.mxu0 %v2190_v33  ;;  %v2348_v33 = vld [vmem:[#allocation7 + $0x234] ss:$28 sps:$4 sm:$0xff]  }
  0x76   :  { %815 = vmatprep.subr.bf16.mxu0 %v2195_v34  ;;  %v2249_v34 = vld [vmem:[#allocation5 + $0x220] ss:$8 sps:$4 sm:$0xff]   ;;  %1701 = vmatprep.subr.bf16.mxu1 %v2348_v33 }
  0x78   :  { %807 = vmatmul.mubr.bf16.vlgmr.msra.gmra.mrb[0].mxu0 %v1867_v36  ;;  %v2350_v36 = vld [vmem:[#allocation7 + $0x230] ss:$28 sps:$4 sm:$0xff]  }
  0x79   :  { %816 = vmatpush1.bf16.msra.mxu0 %v2193_v37  ;;  %847 = vmatprep.mubr.bf16.mxu0 %v1870_v38  ;;  %v2351_v37 = vld [vmem:[#allocation7 + $0x26c] ss:$28 sps:$4 sm:$0xff]   ;;  %v2252_v38 = vld [vmem:[#allocation5 + $0x230] ss:$8 sps:$4 sm:$0xff]  }
  0x7a   :  { %817 = vmatprep.subr.bf16.mxu0 %v2198_v39  ;;  %v2257_v39 = vld [vmem:[#allocation5 + $0x244] ss:$8 sps:$4 sm:$0xff]   ;;  %1702 = vmatpush1.bf16.msra.mxu1 %v2350_v36 }
  0x7b   :  { %1703 = vmatprep.subr.bf16.mxu1 %v2351_v37 }
  0x7d   :  { %818 = vmatpush1.bf16.msra.mxu0 %v2196_v40  ;;  %v2353_v40 = vld [vmem:[#allocation7 + $0x268] ss:$28 sps:$4 sm:$0xff]  }
  0x7e   :  { %819 = vmatprep.subr.bf16.mxu0 %v2201_v41  ;;  %v2354_v41 = vld [vmem:[#allocation7 + $0x2a4] ss:$28 sps:$4 sm:$0xff]   ;;  %1704 = vmatpush1.bf16.msra.mxu1 %v2353_v40 }
  0x7f   :  { %1705 = vmatprep.subr.bf16.mxu1 %v2354_v41 }
  0x81   :  { %820 = vmatpush1.bf16.msra.mxu0 %v2199_v42  ;;  %v2255_v42 = vld [vmem:[#allocation5 + $0x240] ss:$8 sps:$4 sm:$0xff]  }
  0x82   :  { %821 = vmatprep.subr.bf16.mxu0 %v2204_v43  ;;  %v2260_v43 = vld [vmem:[#allocation5 + $0x254] ss:$8 sps:$4 sm:$0xff]  }
  0x85   :  { %822 = vmatpush1.bf16.msra.mxu0 %v2202_v44  ;;  %v2356_v44 = vld [vmem:[#allocation7 + $0x2a0] ss:$28 sps:$4 sm:$0xff]  }
  0x86   :  { %823 = vmatprep.subr.bf16.mxu0 %v2207_v45  ;;  %v2357_v45 = vld [vmem:[#allocation7 + $0x2dc] ss:$28 sps:$4 sm:$0xff]   ;;  %1706 = vmatpush1.bf16.msra.mxu1 %v2356_v44  ;;  %v2371_v44 = vld [vmem:[#allocation7 + $0x44] ss:$28 sps:$4 sm:$0xff]  }
  0x87   :  { %1707 = vmatprep.subr.bf16.mxu1 %v2357_v45  ;;  %v2369_v45 = vld [vmem:[#allocation7 + $0x40] ss:$28 sps:$4 sm:$0xff]  }
  0x89   :  { %824 = vmatpush1.bf16.msra.mxu0 %v2205_v46  ;;  %v2258_v46 = vld [vmem:[#allocation5 + $0x250] ss:$8 sps:$4 sm:$0xff]  }
  0x8a   :  { %825 = vmatprep.subr.bf16.mxu0 %v2210_v47  ;;  %v2263_v47 = vld [vmem:[#allocation5 + $0x264] ss:$8 sps:$4 sm:$0xff]  }
  0x8d   :  { %826 = vmatpush1.bf16.msra.mxu0 %v2208_v48  ;;  %v2359_v48 = vld [vmem:[#allocation7 + $0x2d8] ss:$28 sps:$4 sm:$0xff]  }
  0x8e   :  { %827 = vmatprep.subr.bf16.mxu0 %v2213_v49  ;;  %v2360_v49 = vld [vmem:[#allocation7 + $0x314] ss:$28 sps:$4 sm:$0xff]   ;;  %1708 = vmatpush1.bf16.msra.mxu1 %v2359_v48 }
  0x8f   :  { %1709 = vmatprep.subr.bf16.mxu1 %v2360_v49  ;;  %v2377_v48 = vld [vmem:[#allocation7 + $0xb4] ss:$28 sps:$4 sm:$0xff]  }
  0x90   :  { %v2375_v49 = vld [vmem:[#allocation7 + $0xb0] ss:$28 sps:$4 sm:$0xff]  }
  0x91   :  { %828 = vmatpush1.bf16.msra.mxu0 %v2211_v50  ;;  %v2261_v50 = vld [vmem:[#allocation5 + $0x260] ss:$8 sps:$4 sm:$0xff]  }
  0x92   :  { %829 = vmatprep.subr.bf16.mxu0 %v2216_v51  ;;  %v2266_v51 = vld [vmem:[#allocation5 + $0x274] ss:$8 sps:$4 sm:$0xff]  }
  0x95   :  { %830 = vmatpush1.bf16.msra.mxu0 %v2214_v52  ;;  %v2362_v52 = vld [vmem:[#allocation7 + $0x310] ss:$28 sps:$4 sm:$0xff]  }
  0x96   :  { %831 = vmatprep.subr.bf16.mxu0 %v2219_v53  ;;  %v2264_v53 = vld [vmem:[#allocation5 + $0x270] ss:$8 sps:$4 sm:$0xff]   ;;  %1710 = vmatpush1.bf16.msra.mxu1 %v2362_v52  ;;  %v2383_v52 = vld [vmem:[#allocation7 + $0x124] ss:$28 sps:$4 sm:$0xff]  }
  0x99   :  { %832 = vmatpush1.bf16.msra.mxu0 %v2217_v54  ;;  %v2269_v54 = vld [vmem:[#allocation5 + $0x284] ss:$8 sps:$4 sm:$0xff]  }
  0x9a   :  { %833 = vmatprep.subr.bf16.mxu0 %v2222_v55  ;;  %v2267_v55 = vld [vmem:[#allocation5 + $0x280] ss:$8 sps:$4 sm:$0xff]  }
  0x9d   :  { %834 = vmatpush1.bf16.msra.mxu0 %v2220_v59  ;;  %v2273_v59 = vld [vmem:[#allocation5 + $0x2a0] ss:$8 sps:$4 sm:$0xff]  }
  0x9e   :  { %835 = vmatprep.subr.bf16.mxu0 %v2225_v60  ;;  %v2278_v60 = vld [vmem:[#allocation5 + $0x2b4] ss:$8 sps:$4 sm:$0xff]  }
  0xa1   :  { %836 = vmatpush1.bf16.msra.mxu0 %v2223_v63  ;;  %v2279_v63 = vld [vmem:[#allocation5 + $0x2c0] ss:$8 sps:$4 sm:$0xff]  }
  0xa2   :  { %837 = vmatprep.subr.bf16.mxu0 %v2228_v0  ;;  %v2284_v0 = vld [vmem:[#allocation5 + $0x2d4] ss:$8 sps:$4 sm:$0xff]  }
  0xa5   :  { %838 = vmatpush1.bf16.msra.mxu0 %v2226_v3  ;;  %v2285_v3 = vld [vmem:[#allocation5 + $0x2e0] ss:$8 sps:$4 sm:$0xff]  }
  0xa6   :  { %839 = vmatprep.subr.bf16.mxu0 %v2231_v4  ;;  %v2290_v4 = vld [vmem:[#allocation5 + $0x2f4] ss:$8 sps:$4 sm:$0xff]  }
  0xa9   :  { %840 = vmatpush1.bf16.msra.mxu0 %v2229_v7  ;;  %v1871_v7 = vcombine.low %v2651_v21, %v2651_v21  ;;  %v2311_v21 = vld [vmem:[#allocation5 + $0x360] ss:$8 sps:$4 sm:$0xff]  }
  0xaa   :  { %841 = vmatprep.subr.bf16.mxu0 %v2234_v8  ;;  %v2293_v8 = vld [vmem:[#allocation5 + $0x300] ss:$8 sps:$4 sm:$0xff]  }
  0xad   :  { %842 = vmatpush1.bf16.msra.mxu0 %v2232_v11  ;;  %v2579_v11 = vmov 0  }
  0xae   :  { %843 = vmatprep.subr.bf16.mxu0 %v2237_v12  ;;  %v2301_v12 = vld [vmem:[#allocation5 + $0x324] ss:$8 sps:$4 sm:$0xff]  }
  0xb1   :  { %844 = vmatpush1.bf16.msra.mxu0 %v2235_v15  ;;  %v2302_v15 = vld [vmem:[#allocation5 + $0x330] ss:$8 sps:$4 sm:$0xff]  }
  0xb2   :  { %845 = vmatprep.subr.bf16.mxu0 %v2240_v16  ;;  %v2307_v16 = vld [vmem:[#allocation5 + $0x344] ss:$8 sps:$4 sm:$0xff]  }
  0xb5   :  { %846 = vmatpush1.bf16.msra.mxu0 %v2238_v19  ;;  %v2308_v19 = vld [vmem:[#allocation5 + $0x350] ss:$8 sps:$4 sm:$0xff]  }
  0xb6   :  { %856 = vmatprep.subr.bf16.mxu0 %v2245_v20  ;;  %v2313_v20 = vld [vmem:[#allocation5 + $0x364] ss:$8 sps:$4 sm:$0xff]  }
  0xb8   :  { %848 = vmatmul.mubr.bf16.vlgmr.msra.gmra.mrb[0].mxu0 %v1869_v25  ;;  %v2363_v25 = vld [vmem:[#allocation7 + $0x34c] ss:$28 sps:$4 sm:$0xff]  }
  0xb9   :  { %857 = vmatpush1.bf16.msra.mxu0 %v2243_v24  ;;  %888 = vmatprep.mubr.bf16.mxu0 %v1872_v27  ;;  %v2317_v24 = vld [vmem:[#allocation2 + $0x18] ss:$0 sps:$4 sm:$0xff]   ;;  %v2368_v27 = vld [vmem:[#allocation7 + $0xc] ss:$28 sps:$4 sm:$0xff]  }
  0xba   :  { %858 = vmatprep.subr.bf16.mxu0 %v2248_v26  ;;  %v2365_v26 = vld [vmem:[#allocation7 + $0x348] ss:$28 sps:$4 sm:$0xff]   ;;  %1711 = vmatprep.subr.bf16.mxu1 %v2363_v25  ;;  %v2435_v25 = vld [vmem:[#allocation7 + $0x198] ss:$28 sps:$4 sm:$0xff]  }
  0xbb   :  { %1712 = vmatpush1.bf16.msra.mxu1 %v2365_v26  ;;  %v2440_v26 = vld [vmem:[#allocation7 + $0x1d4] ss:$28 sps:$4 sm:$0xff]  }
  0xbc   :  { %1722 = vmatprep.subr.bf16.mxu1 %v2368_v27  ;;  %v2438_v27 = vld [vmem:[#allocation7 + $0x1d0] ss:$28 sps:$4 sm:$0xff]  }
  0xbd   :  { %859 = vmatpush1.bf16.msra.mxu0 %v2246_v30  ;;  %v181_v30 = vsub.s32 0, %v2659_v29 }
  0xbe   :  { %860 = vmatprep.subr.bf16.mxu0 %v2251_v31  ;;  %v177_v31 = vld [vmem:[%s2708_s2] sm:$0x3] }
  0xbf   :  { %v182_v33 = vrot.slane %v177_v31, %v181_v30 }
  0xc1   :  { %861 = vmatpush1.bf16.msra.mxu0 %v2249_v34  ;;  %v186_v34 = vrot.slane %v177_v31, %v185_v32  ;;  %v2441_v31 = vld [vmem:[#allocation7 + $0x208] ss:$28 sps:$4 sm:$0xff]  }
  0xc2   :  { %862 = vmatprep.subr.bf16.mxu0 %v2254_v35 }
  0xc5   :  { %863 = vmatpush1.bf16.msra.mxu0 %v2252_v38 }
  0xc6   :  { %864 = vmatprep.subr.bf16.mxu0 %v2257_v39 }
  0xc9   :  { %865 = vmatpush1.bf16.msra.mxu0 %v2255_v42  ;;  %v2366_v42 = vld [vmem:[#allocation7 + $0x8] ss:$28 sps:$4 sm:$0xff]  }
  0xca   :  { %866 = vmatprep.subr.bf16.mxu0 %v2260_v43 }
  0xcd   :  { %867 = vmatpush1.bf16.msra.mxu0 %v2258_v46  ;;  %v2374_v46 = vld [vmem:[#allocation7 + $0x7c] ss:$28 sps:$4 sm:$0xff]  }
  0xce   :  { %868 = vmatprep.subr.bf16.mxu0 %v2263_v47  ;;  %v2372_v47 = vld [vmem:[#allocation7 + $0x78] ss:$28 sps:$4 sm:$0xff]  }
  0xd1   :  { %869 = vmatpush1.bf16.msra.mxu0 %v2261_v50  ;;  %v2380_v50 = vld [vmem:[#allocation7 + $0xec] ss:$28 sps:$4 sm:$0xff]  }
  0xd2   :  { %870 = vmatprep.subr.bf16.mxu0 %v2266_v51  ;;  %v2378_v51 = vld [vmem:[#allocation7 + $0xe8] ss:$28 sps:$4 sm:$0xff]  }
  0xd5   :  { %871 = vmatpush1.bf16.msra.mxu0 %v2264_v53  ;;  %v2381_v53 = vld [vmem:[#allocation7 + $0x120] ss:$28 sps:$4 sm:$0xff]  }
  0xd6   :  { %872 = vmatprep.subr.bf16.mxu0 %v2269_v54  ;;  %v2386_v54 = vld [vmem:[#allocation7 + $0x15c] ss:$28 sps:$4 sm:$0xff]  }
  0xd9   :  { %873 = vmatpush1.bf16.msra.mxu0 %v2267_v55  ;;  %v2384_v55 = vld [vmem:[#allocation7 + $0x158] ss:$28 sps:$4 sm:$0xff]  }
  0xda   :  { %874 = vmatprep.subr.bf16.mxu0 %v2272_v56  ;;  %v2389_v56 = vld [vmem:[#allocation7 + $0x194] ss:$28 sps:$4 sm:$0xff]  }
  0xdd   :  { %875 = vmatpush1.bf16.msra.mxu0 %v2270_v57  ;;  %v2387_v57 = vld [vmem:[#allocation7 + $0x190] ss:$28 sps:$4 sm:$0xff]  }
  0xde   :  { %876 = vmatprep.subr.bf16.mxu0 %v2275_v58  ;;  %v2392_v58 = vld [vmem:[#allocation7 + $0x1cc] ss:$28 sps:$4 sm:$0xff]  }
  0xe1   :  { %877 = vmatpush1.bf16.msra.mxu0 %v2273_v59  ;;  %v2390_v59 = vld [vmem:[#allocation7 + $0x1c8] ss:$28 sps:$4 sm:$0xff]  }
  0xe2   :  { %878 = vmatprep.subr.bf16.mxu0 %v2278_v60  ;;  %v2395_v60 = vld [vmem:[#allocation7 + $0x204] ss:$28 sps:$4 sm:$0xff]  }
  0xe5   :  { %879 = vmatpush1.bf16.msra.mxu0 %v2276_v61  ;;  %v2393_v61 = vld [vmem:[#allocation7 + $0x200] ss:$28 sps:$4 sm:$0xff]  }
  0xe6   :  { %880 = vmatprep.subr.bf16.mxu0 %v2281_v62  ;;  %v2398_v62 = vld [vmem:[#allocation7 + $0x23c] ss:$28 sps:$4 sm:$0xff]  }
  0xe9   :  { %881 = vmatpush1.bf16.msra.mxu0 %v2279_v63  ;;  %v2396_v63 = vld [vmem:[#allocation7 + $0x238] ss:$28 sps:$4 sm:$0xff]  }
  0xea   :  { %882 = vmatprep.subr.bf16.mxu0 %v2284_v0  ;;  %v2401_v0 = vld [vmem:[#allocation7 + $0x274] ss:$28 sps:$4 sm:$0xff]  }
  0xed   :  { %883 = vmatpush1.bf16.msra.mxu0 %v2282_v1  ;;  %v2399_v1 = vld [vmem:[#allocation7 + $0x270] ss:$28 sps:$4 sm:$0xff]  }
  0xee   :  { %884 = vmatprep.subr.bf16.mxu0 %v2287_v2  ;;  %v2404_v2 = vld [vmem:[#allocation7 + $0x2ac] ss:$28 sps:$4 sm:$0xff]  }
  0xf1   :  { %885 = vmatpush1.bf16.msra.mxu0 %v2285_v3  ;;  %v2402_v3 = vld [vmem:[#allocation7 + $0x2a8] ss:$28 sps:$4 sm:$0xff]  }
  0xf2   :  { %886 = vmatprep.subr.bf16.mxu0 %v2290_v4  ;;  %v2407_v4 = vld [vmem:[#allocation7 + $0x2e4] ss:$28 sps:$4 sm:$0xff]  }
  0xf5   :  { %887 = vmatpush1.bf16.msra.mxu0 %v2288_v5  ;;  %v2405_v5 = vld [vmem:[#allocation7 + $0x2e0] ss:$28 sps:$4 sm:$0xff]  }
  0xf6   :  { %897 = vmatprep.subr.bf16.mxu0 %v2295_v6  ;;  %v2410_v6 = vld [vmem:[#allocation7 + $0x31c] ss:$28 sps:$4 sm:$0xff]  }
  0xf8   :  { %889 = vmatmul.mubr.bf16.vlgmr.msra.gmra.mrb[0].mxu0 %v1871_v7  ;;  %v2408_v7 = vld [vmem:[#allocation7 + $0x318] ss:$28 sps:$4 sm:$0xff]  }
  0xf9   :  { %898 = vmatpush1.bf16.msra.mxu0 %v2293_v8  ;;  %929 = vmatprep.mubr.bf16.mxu0 %v2579_v11  ;;  %v2413_v8 = vld [vmem:[#allocation7 + $0x354] ss:$28 sps:$4 sm:$0xff]  }
  0xfa   :  { %899 = vmatprep.subr.bf16.mxu0 %v2298_v9  ;;  %v2411_v9 = vld [vmem:[#allocation7 + $0x350] ss:$28 sps:$4 sm:$0xff]  }
  0xfb   :  { %v2414_v11 = vld [vmem:[#allocation7 + $0x10] ss:$28 sps:$4 sm:$0xff]  }
  0xfd   :  { %900 = vmatpush1.bf16.msra.mxu0 %v2296_v10  ;;  %v2416_v10 = vld [vmem:[#allocation7 + $0x14] ss:$28 sps:$4 sm:$0xff]  }
  0xfe   :  { %901 = vmatprep.subr.bf16.mxu0 %v2301_v12  ;;  %v2419_v12 = vld [vmem:[#allocation7 + $0x4c] ss:$28 sps:$4 sm:$0xff]  }
 0x101   :  { %902 = vmatpush1.bf16.msra.mxu0 %v2299_v13  ;;  %v2417_v13 = vld [vmem:[#allocation7 + $0x48] ss:$28 sps:$4 sm:$0xff]  }
 0x102   :  { %903 = vmatprep.subr.bf16.mxu0 %v2304_v14  ;;  %v2422_v14 = vld [vmem:[#allocation7 + $0x84] ss:$28 sps:$4 sm:$0xff]  }
 0x105   :  { %904 = vmatpush1.bf16.msra.mxu0 %v2302_v15  ;;  %v2420_v15 = vld [vmem:[#allocation7 + $0x80] ss:$28 sps:$4 sm:$0xff]  }
 0x106   :  { %905 = vmatprep.subr.bf16.mxu0 %v2307_v16  ;;  %v2425_v16 = vld [vmem:[#allocation7 + $0xbc] ss:$28 sps:$4 sm:$0xff]  }
 0x109   :  { %906 = vmatpush1.bf16.msra.mxu0 %v2305_v17  ;;  %v2423_v17 = vld [vmem:[#allocation7 + $0xb8] ss:$28 sps:$4 sm:$0xff]  }
 0x10a   :  { %907 = vmatprep.subr.bf16.mxu0 %v2310_v18  ;;  %v2428_v18 = vld [vmem:[#allocation7 + $0xf4] ss:$28 sps:$4 sm:$0xff]  }
 0x10d   :  { %908 = vmatpush1.bf16.msra.mxu0 %v2308_v19  ;;  %v2426_v19 = vld [vmem:[#allocation7 + $0xf0] ss:$28 sps:$4 sm:$0xff]  }
 0x10e   :  { %909 = vmatprep.subr.bf16.mxu0 %v2313_v20  ;;  %v2431_v20 = vld [vmem:[#allocation7 + $0x12c] ss:$28 sps:$4 sm:$0xff]  }
 0x111   :  { %910 = vmatpush1.bf16.msra.mxu0 %v2311_v21  ;;  %v2429_v21 = vld [vmem:[#allocation7 + $0x128] ss:$28 sps:$4 sm:$0xff]  }
 0x112   :  { %911 = vmatprep.subr.bf16.mxu0 %v2316_v22  ;;  %v2434_v22 = vld [vmem:[#allocation7 + $0x164] ss:$28 sps:$4 sm:$0xff]  }
 0x115   :  { %912 = vmatpush1.bf16.msra.mxu0 %v2314_v23  ;;  %v2432_v23 = vld [vmem:[#allocation7 + $0x160] ss:$28 sps:$4 sm:$0xff]  }
 0x118   :  { %930 = vmatmul.mubr.bf16.vlgmr.msra.gmra.mrb[0].mxu0 %v2317_v24  ;;  %v2437_v24 = vld [vmem:[#allocation7 + $0x19c] ss:$28 sps:$4 sm:$0xff]  }
 0x1eb   :  { %v931_v35 = vpop.f32.mrb[0].mxu0 }
 0x1ec   :  { %v2120_v36 = vadd.f32 %v931_v35, %v182_v33  ;;  %v933_v37 = vpop.f32.mrb[1].mxu0  ;;  %v2446_v33 = vld [vmem:[#allocation7 + $0x244] ss:$28 sps:$4 sm:$0xff]   ;;  %v2449_v35 = vld [vmem:[#allocation7 + $0x27c] ss:$28 sps:$4 sm:$0xff]  }
 0x1ed   :  { %v2121_v38 = vadd.f32 %v933_v37, %v186_v34  ;;  %v935_v39 = vpop.f32.mrb[2].mxu0  ;;  %v2444_v34 = vld [vmem:[#allocation7 + $0x240] ss:$28 sps:$4 sm:$0xff]   ;;  %v2452_v37 = vld [vmem:[#allocation7 + $0x2b4] ss:$28 sps:$4 sm:$0xff]  }
 0x1ee   :  { %v936_v40 = vpop.f32.mrb[3].mxu0  ;;  %v2672_v43 = vpack.c.bf16 %v2120_v36, %v2120_v36  ;;  %v2447_v36 = vld [vmem:[#allocation7 + $0x278] ss:$28 sps:$4 sm:$0xff]   ;;  %v2455_v39 = vld [vmem:[#allocation7 + $0x2ec] ss:$28 sps:$4 sm:$0xff]  }
 0x1ef   :  { %v2670_v41 = vpack.c.bf16 %v2121_v38, %v2121_v38  ;;  %v2450_v38 = vld [vmem:[#allocation7 + $0x2b0] ss:$28 sps:$4 sm:$0xff]   ;;  %v2453_v40 = vld [vmem:[#allocation7 + $0x2e8] ss:$28 sps:$4 sm:$0xff]  }
 0x1f1   :  { %1713 = vmatprep.mubr.bf16.mxu1 %v2670_v41 }
 0x1f2   :  { %1714 = vmatmul.mubr.bf16.vlgmr.msra.gmra.mrb[0].mxu1 %v2672_v43 }
 0x1f3   :  { %1723 = vmatpush1.bf16.msra.mxu1 %v2366_v42  ;;  %1754 = vmatprep.mubr.bf16.mxu1 %v2670_v41  ;;  %v2458_v42 = vld [vmem:[#allocation7 + $0x324] ss:$28 sps:$4 sm:$0xff]  }
 0x1f4   :  { %1724 = vmatprep.subr.bf16.mxu1 %v2371_v44  ;;  %v2456_v44 = vld [vmem:[#allocation7 + $0x320] ss:$28 sps:$4 sm:$0xff]  }
 0x1f7   :  { %1725 = vmatpush1.bf16.msra.mxu1 %v2369_v45  ;;  %v2461_v45 = vld [vmem:[#allocation7 + $0x35c] ss:$28 sps:$4 sm:$0xff]  }
 0x1f8   :  { %1726 = vmatprep.subr.bf16.mxu1 %v2374_v46  ;;  %v2459_v46 = vld [vmem:[#allocation7 + $0x358] ss:$28 sps:$4 sm:$0xff]  }
 0x1fb   :  { %1727 = vmatpush1.bf16.msra.mxu1 %v2372_v47  ;;  %v2462_v47 = vld [vmem:[#allocation7 + $0x1d8] ss:$28 sps:$4 sm:$0xff]  }
 0x1fc   :  { %1728 = vmatprep.subr.bf16.mxu1 %v2377_v48  ;;  %v2463_v48 = vld [vmem:[#allocation7 + $0x18] ss:$28 sps:$4 sm:$0xff]  }
 0x1ff   :  { %1729 = vmatpush1.bf16.msra.mxu1 %v2375_v49  ;;  %v2464_v49 = vld [vmem:[#allocation7 + $0x210] ss:$28 sps:$4 sm:$0xff]  }
 0x200   :  { %1730 = vmatprep.subr.bf16.mxu1 %v2380_v50  ;;  %v2465_v50 = vld [vmem:[#allocation7 + $0x50] ss:$28 sps:$4 sm:$0xff]  }
 0x203   :  { %1731 = vmatpush1.bf16.msra.mxu1 %v2378_v51  ;;  %v2466_v51 = vld [vmem:[#allocation7 + $0x248] ss:$28 sps:$4 sm:$0xff]  }
 0x204   :  { %1732 = vmatprep.subr.bf16.mxu1 %v2383_v52  ;;  %v2467_v52 = vld [vmem:[#allocation7 + $0x88] ss:$28 sps:$4 sm:$0xff]  }
 0x207   :  { %1733 = vmatpush1.bf16.msra.mxu1 %v2381_v53  ;;  %v2468_v53 = vld [vmem:[#allocation7 + $0x280] ss:$28 sps:$4 sm:$0xff]  }
 0x208   :  { %1734 = vmatprep.subr.bf16.mxu1 %v2386_v54  ;;  %v2469_v54 = vld [vmem:[#allocation7 + $0xc0] ss:$28 sps:$4 sm:$0xff]  }
 0x20b   :  { %1735 = vmatpush1.bf16.msra.mxu1 %v2384_v55  ;;  %v2470_v55 = vld [vmem:[#allocation7 + $0x2b8] ss:$28 sps:$4 sm:$0xff]  }
 0x20c   :  { %1736 = vmatprep.subr.bf16.mxu1 %v2389_v56  ;;  %v2471_v56 = vld [vmem:[#allocation7 + $0xf8] ss:$28 sps:$4 sm:$0xff]  }
 0x20f   :  { %1737 = vmatpush1.bf16.msra.mxu1 %v2387_v57  ;;  %v2472_v57 = vld [vmem:[#allocation7 + $0x2f0] ss:$28 sps:$4 sm:$0xff]  }
 0x210   :  { %1738 = vmatprep.subr.bf16.mxu1 %v2392_v58  ;;  %v2473_v58 = vld [vmem:[#allocation7 + $0x130] ss:$28 sps:$4 sm:$0xff]  }
 0x213   :  { %1739 = vmatpush1.bf16.msra.mxu1 %v2390_v59  ;;  %v2474_v59 = vld [vmem:[#allocation7 + $0x328] ss:$28 sps:$4 sm:$0xff]  }
 0x214   :  { %1740 = vmatprep.subr.bf16.mxu1 %v2395_v60  ;;  %v2476_v60 = vld [vmem:[#allocation7 + $0x360] ss:$28 sps:$4 sm:$0xff]  }
 0x217   :  { %1741 = vmatpush1.bf16.msra.mxu1 %v2393_v61  ;;  %v2477_v61 = vld [vmem:[#allocation7 + $0x1a0] ss:$28 sps:$4 sm:$0xff]  }
 0x218   :  { %1742 = vmatprep.subr.bf16.mxu1 %v2398_v62  ;;  %v1068_v62 = vld [vmem:[%s2710_s4] sm:$0xff]  ;;  %s2580_s4 = smov [#allocation8]  }
 0x219   :  { %s1857_s8 = sshll.u32 %s2580_s4, 4  ;;  %s1858_s8 = int_to_ptr.vmem [resolvable:$true] %s1857_s8 }
 0x21a   :  { %s2544_s9 = scalar_lea.vmem %s1858_s8, 896  ;;  %p2549_p11 = scmp.lt.s32.totalorder %s1858_s8, %s1858_s8 }
 0x21b   :  { %1743 = vmatpush1.bf16.msra.mxu1 %v2396_v63  ;;  %v1073_v63 = vrot.slane %v1068_v62, %v181_v30  ;;  %p2545_p10 = scmp.ne.s32.totalorder %s1858_s8, %s2544_s9  ;;  %p2550_p12 = scmp.lt.s32.totalorder %s2544_s9, %s2544_s9 }
 0x21c   :  { %1744 = vmatprep.subr.bf16.mxu1 %v2401_v0  ;;  %v1077_v0 = vrot.slane %v1068_v62, %v185_v32 }
 0x21d   :  { %p2551_p13 = por %p2550_p12, %p2549_p11 }
 0x21f   :  { %1745 = vmatpush1.bf16.msra.mxu1 %v2399_v1  ;;  %p2552_p0 = pnand %p2551_p13, %p2545_p10 }
 0x220   :  { %1746 = vmatprep.subr.bf16.mxu1 %v2404_v2 }
 0x223   :  { %1747 = vmatpush1.bf16.msra.mxu1 %v2402_v3 }
 0x224   :  { %1748 = vmatprep.subr.bf16.mxu1 %v2407_v4 }
 0x227   :  { %1749 = vmatpush1.bf16.msra.mxu1 %v2405_v5 }
 0x228   :  { %1750 = vmatprep.subr.bf16.mxu1 %v2410_v6 }
 0x22b   :  { %1751 = vmatpush1.bf16.msra.mxu1 %v2408_v7  ;;  %v1084_v7 = vsub.s32 3, %v2659_v29 }
 0x22c   :  { %1752 = vmatprep.subr.bf16.mxu1 %v2413_v8 }
 0x22f   :  { %1753 = vmatpush1.bf16.msra.mxu1 %v2411_v9  ;;  %v1085_v9 = vrot.slane %v1068_v62, %v1084_v7 }
 0x230   :  { %1763 = vmatprep.subr.bf16.mxu1 %v2416_v10 }
 0x232   :  { %1755 = vmatmul.mubr.bf16.vlgmr.msra.gmra.mrb[4].mxu1 %v2672_v43 }
 0x233   :  { %1764 = vmatpush1.bf16.msra.mxu1 %v2414_v11  ;;  %1795 = vmatprep.mubr.bf16.mxu1 %v2670_v41 }
 0x234   :  { %1765 = vmatprep.subr.bf16.mxu1 %v2419_v12 }
 0x237   :  { %1766 = vmatpush1.bf16.msra.mxu1 %v2417_v13 }
 0x238   :  { %1767 = vmatprep.subr.bf16.mxu1 %v2422_v14  ;;  %v1088_v14 = vsub.s32 4, %v2659_v29 }
 0x23b   :  { %1768 = vmatpush1.bf16.msra.mxu1 %v2420_v15  ;;  %v1092_v15 = vsub.s32 5, %v2659_v29 }
 0x23c   :  { %1769 = vmatprep.subr.bf16.mxu1 %v2425_v16  ;;  %v1089_v16 = vrot.slane %v1068_v62, %v1088_v14 }
 0x23f   :  { %1770 = vmatpush1.bf16.msra.mxu1 %v2423_v17  ;;  %v1093_v17 = vrot.slane %v1068_v62, %v1092_v15 }
 0x240   :  { %1771 = vmatprep.subr.bf16.mxu1 %v2428_v18 }
 0x243   :  { %1772 = vmatpush1.bf16.msra.mxu1 %v2426_v19 }
 0x244   :  { %1773 = vmatprep.subr.bf16.mxu1 %v2431_v20 }
 0x247   :  { %1774 = vmatpush1.bf16.msra.mxu1 %v2429_v21 }
 0x248   :  { %1775 = vmatprep.subr.bf16.mxu1 %v2434_v22 }
 0x24b   :  { %1776 = vmatpush1.bf16.msra.mxu1 %v2432_v23 }
 0x24c   :  { %1777 = vmatprep.subr.bf16.mxu1 %v2437_v24  ;;  %v1096_v24 = vsub.s32 6, %v2659_v29 }
 0x24f   :  { %1778 = vmatpush1.bf16.msra.mxu1 %v2435_v25 }
 0x250   :  { %1779 = vmatprep.subr.bf16.mxu1 %v2440_v26  ;;  %v1097_v26 = vrot.slane %v1068_v62, %v1096_v24 }
 0x253   :  { %1780 = vmatpush1.bf16.msra.mxu1 %v2438_v27 }
 0x254   :  { %1781 = vmatprep.subr.bf16.mxu1 %v2443_v28 }
 0x257   :  { %1782 = vmatpush1.bf16.msra.mxu1 %v2441_v31 }
 0x258   :  { %1783 = vmatprep.subr.bf16.mxu1 %v2446_v33 }
 0x25b   :  { %1784 = vmatpush1.bf16.msra.mxu1 %v2444_v34 }
 0x25c   :  { %1785 = vmatprep.subr.bf16.mxu1 %v2449_v35 }
 0x25f   :  { %1786 = vmatpush1.bf16.msra.mxu1 %v2447_v36 }
 0x260   :  { %1787 = vmatprep.subr.bf16.mxu1 %v2452_v37 }
 0x263   :  { %1788 = vmatpush1.bf16.msra.mxu1 %v2450_v38 }
 0x264   :  { %1789 = vmatprep.subr.bf16.mxu1 %v2455_v39 }
 0x267   :  { %1790 = vmatpush1.bf16.msra.mxu1 %v2453_v40 }
 0x268   :  { %1791 = vmatprep.subr.bf16.mxu1 %v2458_v42 }
 0x26b   :  { %1792 = vmatpush1.bf16.msra.mxu1 %v2456_v44 }
 0x26c   :  { %1793 = vmatprep.subr.bf16.mxu1 %v2461_v45 }
 0x26f   :  { %1794 = vmatpush1.bf16.msra.mxu1 %v2459_v46 }
 0x270   :  { %2098 = vmatprep.subr.bf16.mxu1 %v2462_v47 }
 0x272   :  { %1796 = vmatmul.mubr.bf16.vlgmr.msra.gmra.mrb[8].mxu1 %v2672_v43 }
 0x273   :  { %2099 = vmatpush3.bf16.msra.mxu1 %v2463_v48  ;;  %1836 = vmatprep.mubr.bf16.mxu1 %v2670_v41  ;;  %v2475_v41 = vld [vmem:[#allocation7 + $0x168] ss:$28 sps:$4 sm:$0xff]  }
 0x274   :  { %2100 = vmatprep.subr.bf16.mxu1 %v2464_v49 }
 0x277   :  { %2101 = vmatpush3.bf16.msra.mxu1 %v2465_v50 }
 0x278   :  { %2102 = vmatprep.subr.bf16.mxu1 %v2466_v51 }
 0x27b   :  { %2103 = vmatpush3.bf16.msra.mxu1 %v2467_v52 }
 0x27c   :  { %2104 = vmatprep.subr.bf16.mxu1 %v2468_v53 }
 0x27f   :  { %2105 = vmatpush3.bf16.msra.mxu1 %v2469_v54 }
 0x280   :  { %2106 = vmatprep.subr.bf16.mxu1 %v2470_v55 }
 0x283   :  { %2107 = vmatpush3.bf16.msra.mxu1 %v2471_v56 }
 0x284   :  { %2108 = vmatprep.subr.bf16.mxu1 %v2472_v57 }
 0x287   :  { %2109 = vmatpush3.bf16.msra.mxu1 %v2473_v58 }
 0x288   :  { %2110 = vmatprep.subr.bf16.mxu1 %v2474_v59 }
 0x28b   :  { %2111 = vmatpush3.bf16.msra.mxu1 %v2475_v41 }
 0x28c   :  { %2112 = vmatprep.subr.bf16.mxu1 %v2476_v60 }
 0x28f   :  { %2113 = vmatpush3.bf16.msra.mxu1 %v2477_v61 }
 0x292   :  { %1837 = vmatmul.mubr.bf16.vlgmr.msra.gmra.mrb[12].mxu1 %v2672_v43  ;;  %v1080_v43 = vsub.s32 2, %v2659_v29 }
 0x294   :  { %v1081_v8 = vrot.slane %v1068_v62, %v1080_v43 }
 0x2c5   :  { %v1715_v1 = vpop.f32.mrb[0].mxu1 }
 0x2c6   :  { %v1716_v2 = vadd.f32 %v1715_v1, %v1073_v63  ;;  %v1717_v3 = vpop.f32.mrb[1].mxu1 }
 0x2c7   :  { %v1718_v4 = vadd.f32 %v1717_v3, %v1077_v0  ;;  %v1719_v5 = vpop.f32.mrb[2].mxu1 }
 0x2c8   :  { %1844 = vst [vmem:[#allocation8] sm:$0xff] %v1716_v2  ;;  %v1720_v6 = vpop.f32.mrb[3].mxu1 }
 0x2c9   :  { %1845 = vst [vmem:[#allocation8 + $0x8] sm:$0xff] %v1718_v4 }
 0x305   :  { %v1756_v10 = vpop.f32.mrb[4].mxu1 }
 0x306   :  { %v1757_v11 = vadd.f32 %v1756_v10, %v1081_v8  ;;  %v1758_v30 = vpop.f32.mrb[5].mxu1 }
 0x307   :  { %v1759_v12 = vadd.f32 %v1758_v30, %v1085_v9  ;;  %v1760_v13 = vpop.f32.mrb[6].mxu1 }
 0x308   :  { %1846 = vst [vmem:[#allocation8 + $0x10] sm:$0xff] %v1757_v11  ;;  %v1761_v32 = vpop.f32.mrb[7].mxu1 }
 0x309   :  { %1847 = vst [vmem:[#allocation8 + $0x18] sm:$0xff] %v1759_v12 }
 0x345   :  { %v1797_v18 = vpop.f32.mrb[8].mxu1 }
 0x346   :  { %v1798_v19 = vadd.f32 %v1797_v18, %v1089_v16  ;;  %v1799_v20 = vpop.f32.mrb[9].mxu1 }
 0x347   :  { %v1800_v21 = vadd.f32 %v1799_v20, %v1093_v17  ;;  %v1801_v22 = vpop.f32.mrb[10].mxu1 }
 0x348   :  { %1848 = vst [vmem:[#allocation8 + $0x20] sm:$0xff] %v1798_v19  ;;  %v1802_v23 = vpop.f32.mrb[11].mxu1 }
 0x349   :  { %1849 = vst [vmem:[#allocation8 + $0x28] sm:$0xff] %v1800_v21 }
 0x365   :  { %v2114_v25 = vpop.f32.mrb[12].mxu1 }
 0x366   :  { %v2115_v27 = vpop.f32.mrb[13].mxu1 }
 0x367   :  { %v2116_v28 = vadd.f32 %v2115_v27, %v2114_v25  ;;  %v2117_v31 = vpop.f32.mrb[14].mxu1 }
 0x368   :  { %v2118_v33 = vpop.f32.mrb[15].mxu1 }
 0x369   :  { %v1839_v34 = vadd.f32 %v2116_v28, %v1097_v26 }
 0x36b   :  { %1850 = vst [vmem:[#allocation8 + $0x30] sm:$0xff] %v1839_v34 }
 0x36c   :  { %2555 = shalt.err (!%p2552_p0)
}
 0x36d   :  { %s2556_s12 = scalar_lea.hbm %s2711_s5, 896 }
 0x36e   :  { %p2557_p1 = scmp.ne.s32.totalorder %s2711_s5, %s2556_s12  ;;  %p2560_p2 = scmp.lt.u32.totalorder %s2556_s12, %s2711_s5 }
 0x370   :  { %p2562_p3 = pnand %p2560_p2, %p2557_p1 }
 0x372   :  { %2565 = shalt.err (!%p2562_p3)
}
 0x373   :  { %1860 = dma.vmem_to_hbm [thread:$0]  %s1858_s8, 896, %s2711_s5, [#allocation4]  }
 0x374   :  { %2570 = dma.done.wait [#allocation4], 896  }
 0x375   :  { %2571 = vsyncadd [#allocation4], 4294966400 }
 0x376   :  { %1864 = vsyncpa [#allocation3], 1 }
 0x377   :  { %1865 = vsyncpa [#allocation6], 1 }
 0x378   :  { %1866 = vsyncpa [#allocation4], 1 }

</bundles_post_ra>
